<compile_context>
chip_gen: v7x
topology: tpu7x:2x2x1
jax: 0.10.0
libtpu: 0.0.40
codegen_flags: <defaults>
</compile_context>

<pallas_src>
import functools

import jax
import jax.numpy as jnp
from jax.experimental import pallas as pl
from jax.experimental.pallas import tpu as pltpu


# ---------------------------------------------------------------------------
# Kernels
# ---------------------------------------------------------------------------
def _se_kernel_nchw(x_ref, w1t_ref, b1_ref, w2t_ref, b2_ref, o_ref, *, inv_hw):
    # x_ref : (nb, C, HW)  native dtype       w1t_ref: (C, Cr)  native dtype
    # b1_ref: (1, Cr) f32                      w2t_ref: (Cr, C)  native dtype
    # b2_ref: (1, C)  f32

    # --- squeeze: global average pool over the spatial (lane) axis ---
    pooled = jnp.sum(x_ref[...].astype(jnp.float32), axis=-1) * inv_hw  # (nb, C)

    # --- excitation MLP (f32 accumulation; weights stay in native dtype) ---
    h = jnp.dot(pooled.astype(w1t_ref.dtype), w1t_ref[...],
                preferred_element_type=jnp.float32) + b1_ref[...]       # (nb, Cr)
    h = jnp.maximum(h, 0.0)                                             # ReLU
    s = jnp.dot(h.astype(w2t_ref.dtype), w2t_ref[...],
                preferred_element_type=jnp.float32) + b2_ref[...]       # (nb, C)
    # Hardsigmoid: relu6(x + 3) / 6 == clip(x/6 + 0.5, 0, 1)
    s = jnp.clip(s * (1.0 / 6.0) + 0.5, 0.0, 1.0)

    # --- scale: re-read x from VMEM (cheap vld) and broadcast-multiply ---
    o_ref[...] = x_ref[...] * s[:, :, None].astype(o_ref.dtype)


def _se_kernel_nhwc(x_ref, w1t_ref, b1_ref, w2t_ref, b2_ref, o_ref, *, inv_hw):
    # Lane-dense variant: x_ref : (nb, HW, C) — channels on the lane axis.
    pooled = jnp.sum(x_ref[...].astype(jnp.float32), axis=1) * inv_hw   # (nb, C)

    h = jnp.dot(pooled.astype(w1t_ref.dtype), w1t_ref[...],
                preferred_element_type=jnp.float32) + b1_ref[...]
    h = jnp.maximum(h, 0.0)
    s = jnp.dot(h.astype(w2t_ref.dtype), w2t_ref[...],
                preferred_element_type=jnp.float32) + b2_ref[...]
    s = jnp.clip(s * (1.0 / 6.0) + 0.5, 0.0, 1.0)

    o_ref[...] = x_ref[...] * s[:, None, :].astype(o_ref.dtype)


# ---------------------------------------------------------------------------
# Wrapper-side sizing helpers
# ---------------------------------------------------------------------------
def _vmem_budget_bytes():
    """~75% of physical VMEM for this generation (v5e/v6e 128 MiB, v7x 64 MiB)."""
    cap = None
    try:
        info = pltpu.get_tpu_info()
        cap = getattr(info, "vmem_capacity_bytes", None)
    except Exception:
        cap = None
    if not cap:
        cap = 64 << 20  # conservative fallback = v7x physical VMEM
    return (int(cap) * 3) // 4


def _choose_nb(n, per_image_bytes, weight_bytes, budget_bytes):
    """Largest nb with ~4 MiB blocks, >=2 grid steps, and VMEM fit."""
    target_block = 4 << 20
    nb = max(1, target_block // max(per_image_bytes, 1))
    nb = min(nb, n)
    if n >= 2:
        # Keep the batch ("parallel") axis split across >=2 grid steps so the
        # pipeline overlaps DMA/compute and v7x's two TensorCores both work.
        nb = min(nb, pl.cdiv(n, 2))
    headroom = 1 << 20
    while nb > 1 and 4 * nb * per_image_bytes + weight_bytes + headroom > budget_bytes:
        nb -= 1
    return int(max(1, nb))


def _se_pallas(x3, w1t, b1_2d, w2t, b2_2d, kernel_fn, hw):
    """Shared pallas_call builder. x3 is (N, d1, d2) with the x block = full (d1, d2)."""
    N, d1, d2 = x3.shape
    dtype = x3.dtype
    itemsize = jnp.dtype(dtype).itemsize
    C, Cr = w1t.shape
    wbytes = jnp.dtype(w1t.dtype).itemsize
    weight_bytes = 2 * C * Cr * wbytes + (C + Cr) * 4

    per_image_bytes = d1 * d2 * itemsize
    budget = _vmem_budget_bytes()
    nb = _choose_nb(N, per_image_bytes, weight_bytes, budget)
    grid = (pl.cdiv(N, nb),)

    block_bytes = nb * per_image_bytes
    vmem_bytes = int(min(max(4 * block_bytes + weight_bytes + (1 << 20), 4 << 20),
                         budget))

    cost = pl.CostEstimate(
        flops=4 * N * C * Cr,                                   # two tiny matmuls
        transcendentals=0,
        bytes_accessed=2 * N * per_image_bytes + weight_bytes,  # pure HBM stream
    )

    kernel = functools.partial(kernel_fn, inv_hw=1.0 / hw)

    return pl.pallas_call(
        kernel,
        out_shape=jax.ShapeDtypeStruct((N, d1, d2), dtype),
        grid=grid,
        in_specs=[
            pl.BlockSpec((nb, d1, d2), lambda i: (i, 0, 0)),    # x (tiled over N)
            pl.BlockSpec((C, Cr), lambda i: (0, 0)),            # w1^T (resident)
            pl.BlockSpec((1, Cr), lambda i: (0, 0)),            # b1
            pl.BlockSpec((Cr, C), lambda i: (0, 0)),            # w2^T
            pl.BlockSpec((1, C), lambda i: (0, 0)),             # b2
        ],
        out_specs=pl.BlockSpec((nb, d1, d2), lambda i: (i, 0, 0)),
        compiler_params=pltpu.CompilerParams(
            dimension_semantics=("parallel",),
            vmem_limit_bytes=vmem_bytes,
        ),
        cost_estimate=cost,
    )(x3, w1t, b1_2d, w2t, b2_2d)


# ---------------------------------------------------------------------------
# Public entry points
# ---------------------------------------------------------------------------
def squeeze_excitation(x_nchw, w1, b1, w2, b2):
    """SE block forward, NCHW layout (matches the PyTorch module).

    x_nchw: (N, C, H, W) in its native dtype (f32 / bf16).
    w1: (C//4, C), b1: (C//4,), w2: (C, C//4), b2: (C,)  (PyTorch Linear layout).
    """
    N, C, H, W = x_nchw.shape
    HW = H * W
    Cr = w1.shape[0]

    x3 = x_nchw.reshape(N, C, HW)
    w1t = jnp.asarray(w1).T                               # (C, Cr), native dtype
    w2t = jnp.asarray(w2).T                               # (Cr, C), native dtype
    b1_2d = jnp.asarray(b1, jnp.float32).reshape(1, Cr)
    b2_2d = jnp.asarray(b2, jnp.float32).reshape(1, C)

    out3 = _se_pallas(x3, w1t, b1_2d, w2t, b2_2d, _se_kernel_nchw, HW)
    return out3.reshape(N, C, H, W)


def squeeze_excitation_nhwc(x_nhwc, w1, b1, w2, b2):
    """Lane-dense SE forward for graphs that are already NHWC (channels last).

    Avoids masked stores / padded lanes when HW % 128 != 0 (e.g. 7x7, 14x14).
    """
    N, H, W, C = x_nhwc.shape
    HW = H * W
    Cr = w1.shape[0]

    x3 = x_nhwc.reshape(N, HW, C)
    w1t = jnp.asarray(w1).T
    w2t = jnp.asarray(w2).T
    b1_2d = jnp.asarray(b1, jnp.float32).reshape(1, Cr)
    b2_2d = jnp.asarray(b2, jnp.float32).reshape(1, C)

    out3 = _se_pallas(x3, w1t, b1_2d, w2t, b2_2d, _se_kernel_nhwc, HW)
    return out3.reshape(N, H, W, C)


# ---------------------------------------------------------------------------
# Reference + test
# ---------------------------------------------------------------------------
def _reference(x, w1, b1, w2, b2):
    """Pure-JAX reference mirroring the PyTorch forward (NCHW)."""
    pooled = jnp.mean(x.astype(jnp.float32), axis=(2, 3))      # AdaptiveAvgPool2d(1)
    h = jnp.maximum(pooled @ w1.T + b1, 0.0)                   # Linear1 + ReLU
    s = h @ w2.T + b2                                          # Linear2
    s = jnp.clip(s / 6.0 + 0.5, 0.0, 1.0)                      # Hardsigmoid
    return x * s[:, :, None, None].astype(x.dtype)


if __name__ == "__main__":
    # Small deterministic problem: N=2, C=8 (so C//4=2), H=W=16 (HW=256).
    N, C, H, W = 2, 8, 16, 16
    Cr = C // 4

    key = jax.random.PRNGKey(0)
    kx, k1, k2, k3, k4 = jax.random.split(key, 5)

    x = jax.random.normal(kx, (N, C, H, W), dtype=jnp.float32)

    # PyTorch nn.Linear-style init: U(-1/sqrt(fan_in), 1/sqrt(fan_in)).
    lim1 = 1.0 / jnp.sqrt(C)
    w1 = jax.random.uniform(k1, (Cr, C), jnp.float32, -lim1, lim1)
    b1 = jax.random.uniform(k2, (Cr,), jnp.float32, -lim1, lim1)
    lim2 = 1.0 / jnp.sqrt(Cr)
    w2 = jax.random.uniform(k3, (C, Cr), jnp.float32, -lim2, lim2)
    b2 = jax.random.uniform(k4, (C,), jnp.float32, -lim2, lim2)

    ref = _reference(x, w1, b1, w2, b2)

    # NCHW path (matches the PyTorch module layout).
    out = jax.block_until_ready(squeeze_excitation(x, w1, b1, w2, b2))
    assert out.shape == (N, C, H, W)
    assert out.dtype == x.dtype
    assert jnp.allclose(out, ref, atol=1e-5, rtol=1e-5), "NCHW mismatch vs reference"

    # Lane-dense NHWC path (channels-last graphs).
    x_nhwc = jnp.transpose(x, (0, 2, 3, 1))
    out_nhwc = jax.block_until_ready(squeeze_excitation_nhwc(x_nhwc, w1, b1, w2, b2))
    ref_nhwc = jnp.transpose(ref, (0, 2, 3, 1))
    assert jnp.allclose(out_nhwc, ref_nhwc, atol=1e-5, rtol=1e-5), "NHWC mismatch"

    print("KERNEL_OK")
</pallas_src>

<mosaic_0001>
module attributes {stable_mosaic.version = 11 : i64} {
  func.func @_se_kernel_nchw(%arg0: i32, %arg1: memref<1x8x256xf32, #tpu.memory_space<vmem>>, %arg2: memref<8x2xf32, #tpu.memory_space<vmem>>, %arg3: memref<1x2xf32, #tpu.memory_space<vmem>>, %arg4: memref<2x8xf32, #tpu.memory_space<vmem>>, %arg5: memref<1x8xf32, #tpu.memory_space<vmem>>, %arg6: memref<1x8x256xf32, #tpu.memory_space<vmem>>) attributes {dimension_semantics = [#tpu.dimension_semantics<parallel>], iteration_bounds = array<i64: 2>, scalar_prefetch = 0 : i64, scratch_operands = 0 : i64, tpu.core_type = #tpu.core_type<tc>, window_params = [{transform_indices = @transform_0, window_bounds = array<i64: 1, 8, 256>}, {pipeline_mode = #tpu.pipeline_mode<synchronous>, transform_indices = @transform_1, window_bounds = array<i64: 8, 2>}, {pipeline_mode = #tpu.pipeline_mode<synchronous>, transform_indices = @transform_2, window_bounds = array<i64: 1, 2>}, {pipeline_mode = #tpu.pipeline_mode<synchronous>, transform_indices = @transform_3, window_bounds = array<i64: 2, 8>}, {pipeline_mode = #tpu.pipeline_mode<synchronous>, transform_indices = @transform_4, window_bounds = array<i64: 1, 8>}, {transform_indices = @transform_5, window_bounds = array<i64: 1, 8, 256>}]} {
    %c0 = arith.constant 0 : index
    %c0_0 = arith.constant 0 : index
    %c0_1 = arith.constant 0 : index
    %0 = vector.load %arg1[%c0, %c0_0, %c0_1] : memref<1x8x256xf32, #tpu.memory_space<vmem>>, vector<1x8x256xf32>
    %cst = arith.constant dense<0.000000e+00> : vector<1x8xf32>
    %1 = vector.multi_reduction <add>, %0, %cst [2] : vector<1x8x256xf32> to vector<1x8xf32>
    %cst_2 = arith.constant 3.906250e-03 : f32
    %2 = vector.broadcast %cst_2 : f32 to vector<1x8xf32>
    %3 = arith.mulf %1, %2 : vector<1x8xf32>
    %c0_3 = arith.constant 0 : index
    %c0_4 = arith.constant 0 : index
    %4 = vector.load %arg2[%c0_3, %c0_4] : memref<8x2xf32, #tpu.memory_space<vmem>>, vector<8x2xf32>
    %cst_5 = arith.constant dense<0.000000e+00> : vector<1x2xf32>
    %5 = tpu.matmul %3, %4, %cst_5 {dimension_numbers = #tpu.dot_dimension_numbers<[1], [0], [0], [1], [0, 0, 1, 1], [], []>} : vector<1x8xf32>, vector<8x2xf32>, vector<1x2xf32> -> vector<1x2xf32>
    %c0_6 = arith.constant 0 : index
    %c0_7 = arith.constant 0 : index
    %6 = vector.load %arg3[%c0_6, %c0_7] : memref<1x2xf32, #tpu.memory_space<vmem>>, vector<1x2xf32>
    %7 = arith.addf %5, %6 : vector<1x2xf32>
    %cst_8 = arith.constant 0.000000e+00 : f32
    %8 = vector.broadcast %cst_8 : f32 to vector<1x2xf32>
    %9 = arith.maximumf %7, %8 : vector<1x2xf32>
    %c0_9 = arith.constant 0 : index
    %c0_10 = arith.constant 0 : index
    %10 = vector.load %arg4[%c0_9, %c0_10] : memref<2x8xf32, #tpu.memory_space<vmem>>, vector<2x8xf32>
    %cst_11 = arith.constant dense<0.000000e+00> : vector<1x8xf32>
    %11 = tpu.matmul %9, %10, %cst_11 {dimension_numbers = #tpu.dot_dimension_numbers<[1], [0], [0], [1], [0, 0, 1, 1], [], []>} : vector<1x2xf32>, vector<2x8xf32>, vector<1x8xf32> -> vector<1x8xf32>
    %c0_12 = arith.constant 0 : index
    %c0_13 = arith.constant 0 : index
    %12 = vector.load %arg5[%c0_12, %c0_13] : memref<1x8xf32, #tpu.memory_space<vmem>>, vector<1x8xf32>
    %13 = arith.addf %11, %12 : vector<1x8xf32>
    %cst_14 = arith.constant 0.166666672 : f32
    %14 = vector.broadcast %cst_14 : f32 to vector<1x8xf32>
    %15 = arith.mulf %13, %14 : vector<1x8xf32>
    %cst_15 = arith.constant 5.000000e-01 : f32
    %16 = vector.broadcast %cst_15 : f32 to vector<1x8xf32>
    %17 = arith.addf %15, %16 : vector<1x8xf32>
    %cst_16 = arith.constant 0.000000e+00 : f32
    %cst_17 = arith.constant 1.000000e+00 : f32
    %18 = vector.broadcast %cst_16 : f32 to vector<1x8xf32>
    %19 = arith.maximumf %18, %17 : vector<1x8xf32>
    %20 = vector.broadcast %cst_17 : f32 to vector<1x8xf32>
    %21 = arith.minimumf %20, %19 : vector<1x8xf32>
    %c0_18 = arith.constant 0 : index
    %c0_19 = arith.constant 0 : index
    %c0_20 = arith.constant 0 : index
    %22 = vector.load %arg1[%c0_18, %c0_19, %c0_20] : memref<1x8x256xf32, #tpu.memory_space<vmem>>, vector<1x8x256xf32>
    %23 = vector.shape_cast %21 : vector<1x8xf32> to vector<1x8x1xf32>
    %24 = vector.broadcast %23 : vector<1x8x1xf32> to vector<1x8x256xf32>
    %25 = arith.mulf %22, %24 : vector<1x8x256xf32>
    %c0_21 = arith.constant 0 : index
    %c0_22 = arith.constant 0 : index
    %c0_23 = arith.constant 0 : index
    %26 = vector.load %arg6[%c0_21, %c0_22, %c0_23] : memref<1x8x256xf32, #tpu.memory_space<vmem>>, vector<1x8x256xf32>
    tpu.vector_store %arg6[%c0_21, %c0_22, %c0_23], %25 {strides = array<i32>} : memref<1x8x256xf32, #tpu.memory_space<vmem>>, vector<1x8x256xf32>,
    return
  }
  func.func @transform_0(%arg0: i32) -> (i32, i32, i32) {
    %c0_i32 = arith.constant 0 : i32
    %c0_i32_0 = arith.constant 0 : i32
    %c0_i32_1 = arith.constant 0 : i32
    return %arg0, %c0_i32, %c0_i32_0 : i32, i32, i32
  }
  func.func @transform_1(%arg0: i32) -> (i32, i32) {
    %c0_i32 = arith.constant 0 : i32
    %c0_i32_0 = arith.constant 0 : i32
    %c0_i32_1 = arith.constant 0 : i32
    return %c0_i32, %c0_i32_0 : i32, i32
  }
  func.func @transform_2(%arg0: i32) -> (i32, i32) {
    %c0_i32 = arith.constant 0 : i32
    %c0_i32_0 = arith.constant 0 : i32
    %c0_i32_1 = arith.constant 0 : i32
    return %c0_i32, %c0_i32_0 : i32, i32
  }
  func.func @transform_3(%arg0: i32) -> (i32, i32) {
    %c0_i32 = arith.constant 0 : i32
    %c0_i32_0 = arith.constant 0 : i32
    %c0_i32_1 = arith.constant 0 : i32
    return %c0_i32, %c0_i32_0 : i32, i32
  }
  func.func @transform_4(%arg0: i32) -> (i32, i32) {
    %c0_i32 = arith.constant 0 : i32
    %c0_i32_0 = arith.constant 0 : i32
    %c0_i32_1 = arith.constant 0 : i32
    return %c0_i32, %c0_i32_0 : i32, i32
  }
  func.func @transform_5(%arg0: i32) -> (i32, i32, i32) {
    %c0_i32 = arith.constant 0 : i32
    %c0_i32_0 = arith.constant 0 : i32
    %c0_i32_1 = arith.constant 0 : i32
    return %arg0, %c0_i32, %c0_i32_0 : i32, i32, i32
  }
}

</mosaic_0001>

<bundles_post_ra>
// kernel: tpu_custom_call.1
= control target key start
LH: loop header
LB: loop body
LE: loop exit
PB: predicated region body
PF: predicated region fallthrough
CT: control target
= control target key end

     0   :  { %10 = vsyncpa [#allocation3], 0  ;;  %s900_s0 = inlined_call_operand.hbm [shape: f32[2,8,256], index: 0, kind: input, shape index: {}]   ;;  %s901_s1 = inlined_call_operand.vmem [shape: f32[8,2], index: 1, kind: input, shape index: {}]   ;;  %s902_s2 = inlined_call_operand.vmem [shape: f32[1,2], index: 2, kind: input, shape index: {}]   ;;  %s903_s3 = inlined_call_operand.vmem [shape: f32[2,8], index: 3, kind: input, shape index: {}]   ;;  %s904_s4 = inlined_call_operand.vmem [shape: f32[1,8], index: 4, kind: input, shape index: {}]   ;;  %s905_s5 = inlined_call_operand.hbm [shape: f32[2,8,256], index: 5, kind: output, shape index: {}]  }
   0x1   :  { %12 = vsyncpa [#allocation3 + $0x1], 0 }
   0x2   :  { %13 = vsyncpa [#allocation4], 0 }
   0x3   :  { %15 = vsyncpa [#allocation4 + $0x1], 0  ;;  %s723_s18 = smov 0   ;;  %s725_s19 = smov 0  }
   0x4   :  { %s727_s20 = smov 0   ;;  %s729_s21 = smov 0  }
   0x5 LB: > { %s744_s22 = sadd.s32 4294967295, %s687_s21   ;;  %s510_s23 = sadd.s32 4294967294, %s687_s21   ;;  %s687_s21 = sphi %s729_s21, %s920_s21   ;;  %s683_s20 = sphi %s727_s20, %s919_s20   ;;  %s679_s19 = sphi %s725_s19, %s918_s19   ;;  %s675_s18 = sphi %s723_s18, %s917_s18  }
   0x6   : > { %s748_s24 = sadd.s32 1, %s687_s21   ;;  %s28_s25 = sadd.s32 1, %s683_s20 }
   0x7   : > { %s25_s26 = ssub.s32 %s687_s21, %s748_s24  ;;  %p35_p0 = scmp.ne.s32.totalorder %s683_s20, %s679_s19 }
   0x8   : > { %p26_p1 = scmp.eq.s32.totalorder %s25_s26, 0  ;;  %p36_p2 = scmp.eq.s32.totalorder %s687_s21, 0 }
   0x9   : > { %p41_p3 = scmp.ne.s32.totalorder %s679_s19, %s675_s18  ;;  %p42_p4 = scmp.eq.s32.totalorder %s744_s22, 0 }
   0xa   : > { %s760_s27 = scalar_select %p26_p1, %s683_s20, %s28_s25  }
   0xb   : > { %p762_p5 = por %p36_p2, %p35_p0  ;;  %p766_p6 = por %p42_p4, %p41_p3 }
   0xc   : > { %p149_p7 = scmp.eq.s32.totalorder %s744_s22, 1  ;;  %p155_p8 = scmp.eq.s32.totalorder %s510_s23, 1 }
   0xd   : > { %p555_p10 = scmp.lt.s32.totalorder %s687_s21, 2  ;;  %s187_s7 = sand.u32 1, %s683_s20  }
   0xe   : > { %p773_p11 = por %p149_p7, %p35_p0  ;;  %p777_p12 = por %p155_p8, %p41_p3 }
   0xf   : > { %s527_s8 = sshll.u32 %s687_s21, 8  ;;  %s513_s9 = sshll.u32 %s187_s7, 4 }
  0x10   : > { %s909_s30 = scalar_select %p773_p11, 1, 0 }
  0x11   : > { %s910_s6 = scalar_select %p777_p12, 1, 0 }
  0x12   : > { %s786_s12 = scalar_lea.hbm %s900_s0, %s527_s8  ;;  %s191_s13 = scalar_lea.vmem [#allocation2], %s513_s9 }
  0x13   : > { %s199_s14 = sshll.u32 %s191_s13, 4  ;;  %p790_p13 = pnand %p555_p10, %p762_p5  ;;  %s794_s14 = int_to_ptr.vmem [resolvable:$true] %s199_s14 }
  0x14   : > { %s188_s16 = scalar_lea.sflag [#allocation3], %s187_s7  ;;  %s591_s17 = scalar_lea.hbm %s786_s12, 256 }
  0x15   : > { %p592_p2 = scmp.ne.s32.totalorder %s786_s12, %s591_s17  ;;  %p593_p3 = pneg %p790_p13 }
  0x16   : > { %s596_s26 = scalar_lea.hbm %s900_s0, 512  ;;  %p597_p5 = scmp.lt.u32.totalorder %s786_s12, %s900_s0 }
  0x17   : > { %p594_p4 = pnand %p593_p3, %p592_p2  ;;  %p598_p8 = scmp.lt.u32.totalorder %s596_s26, %s591_s17 }
  0x18   : > { %p600_p9 = scmp.lt.u32.totalorder %s591_s17, %s786_s12 }
  0x19   : > { %p595_p7 = pneg %p594_p4  ;;  %p599_p10 = por %p598_p8, %p597_p5 }
  0x1b   : > { %p601_p0 = por %p600_p9, %p599_p10 }
  0x1d   : > { %p602_p1 = pnand %p601_p0, %p595_p7 }
  0x1f   : > { %605 = shalt.err (!%p602_p1)
}
  0x20   : > { %s606_s7 = scalar_lea.vmem %s794_s14, 256  ;;  %s689_s9 = smov [#allocation2]  }
  0x21   : > { %p607_p2 = scmp.ne.s32.totalorder %s794_s14, %s606_s7  ;;  %s611_s10 = sshll.u32 %s689_s9, 4  ;;  %s612_s10 = int_to_ptr.vmem [resolvable:$false] %s611_s10 }
  0x22   : > { %s613_s11 = scalar_lea.vmem %s612_s10, 512  ;;  %p614_p11 = scmp.lt.s32.totalorder %s794_s14, %s612_s10 }
  0x23   : > { %p609_p4 = pnand %p607_p2, %p593_p3  ;;  %p615_p5 = scmp.lt.s32.totalorder %s613_s11, %s606_s7 }
  0x25   : > { %p610_p12 = pneg %p609_p4  ;;  %p616_p8 = por %p615_p5, %p614_p11 }
  0x27   : > { %p617_p9 = pnand %p616_p8, %p610_p12 }
  0x29   : > { %620 = shalt.err (!%p617_p9)
}
  0x2a   : > { %550 = dma.hbm_to_vmem [thread:$0]  (!%p790_p13), %s786_s12, 256, %s794_s14, %s188_s16  }
  0x2b   : > { %p912_p0 = scmp.lt.s32.totalorder %s687_s21, 3  ;;  %p913_p1 = scmp.ge.s32.totalorder %s687_s21, 1 }
  0x2d   : > { %p205_p3 = pnand %p913_p1, %p912_p0 }
  0x2e   : > { %s828_s13 = sand.u32 (!%p205_p3), 1, %s679_s19  }
  0x2f   : > { %208 = sbr.rel (%p205_p3) target bundleno = 775 (0x307), region = 40  ;;  %s517_s17 = sshll.u32 (!%p205_p3), %s828_s13, 4 }
  0x30   : > { %s211_s23 = scalar_lea.sflag (!%p205_p3), [#allocation3], %s828_s13  ;;  %s214_s15 = scalar_lea.vmem (!%p205_p3), [#allocation2], %s517_s17 }
  0x36   : > { %666 = dma.done.wait (%p766_p6), %s211_s23, 256  }
  0x37   : > { %668 = vsyncadd (%p766_p6), %s211_s23, 4294967040  ;;  %v241_v0 = vld [vmem:[%s214_s15] sm:$0xff]  ;;  %v242_v1 = vld [vmem:[%s214_s15 + $0x8] sm:$0xff]  ;;  %v690_v3 = vmov 0.0   ;;  %vm691_vm0 = vmmov 0   ;;  %v250_v5 = vlaneseq  ;;  %vm256_vm1 = vcmask 64512  }
  0x38   : > { %v243_v2 = vadd.f32 %v242_v1, %v241_v0  ;;  %533 = vmatprep.subr.mxu0 %v690_v3  ;;  %v247_v4 = vld [vmem:[%s901_s1] sm:$0xff]  ;;  %538 = vmatprep.subr.mxu1 %v690_v3  ;;  %vm336_vm2 = vcmask 1041408   ;;  %vm332_vm3 = vcmask 15360   ;;  %s528_s7 = sshll.u32 %s744_s22, 8  ;;  %s240_s9 = scalar_lea.vmem [#allocation5], %s517_s17 }
  0x39   : > { %534 = vmatpush3.msra.mxu0 %v247_v4  ;;  %535 = vmatprep.mubr.msk.f32.mxu0 %vm691_vm0, %v690_v3  ;;  %v251_v6 = vand.u32 127, %v250_v5  ;;  %v253_v7 = vshrl.u32 %v250_v5, 7  ;;  %v330_v12 = vld [vmem:[%s903_s3] sm:$0x3]  ;;  %s440_s10 = sshll.u32 %s240_s9, 4  ;;  %s856_s15 = scalar_lea.hbm %s905_s5, %s528_s7  ;;  %s858_s10 = int_to_ptr.vmem [resolvable:$true] %s440_s10 }
  0x3a   : > { %244 = vadd.xlane.f32.xlu0 %v243_v2  ;;  %540 = vmatprep.mubr.msk.f32.mxu1 %vm691_vm0, %v690_v3  ;;  %v248_v13 = vld [vmem:[%s902_s2] sm:$0x1]  ;;  %s426_s12 = scalar_lea.sflag [#allocation4], %s828_s13  ;;  %s621_s22 = scalar_lea.vmem %s858_s10, 256 }
  0x3b   : > { %v254_v8 = vsub.s32 %v251_v6, %v253_v7  ;;  %539 = vmatpush3.msk.msra.mxu1 %vm336_vm2, %v330_v12  ;;  %v331_v18 = vld [vmem:[%s904_s4] sm:$0x1]  ;;  %v416_v25 = vsub.s32 0, %v253_v7  ;;  %p622_p6 = scmp.ne.s32.totalorder %s858_s10, %s621_s22  ;;  %p914_p11 = scmp.ne.s32.totalorder %s909_s30, 0 }
  0x3c   : > { %s692_s17 = smov [#allocation5]  }
  0x3d   : > { %p623_p12 = pnand %p622_p6, %p914_p11  ;;  %s625_s14 = sshll.u32 %s692_s17, 4  ;;  %s626_s14 = int_to_ptr.vmem [resolvable:$false] %s625_s14 }
  0x3e   : > { %s627_s29 = scalar_lea.vmem %s626_s14, 512  ;;  %p628_p7 = scmp.lt.s32.totalorder %s858_s10, %s626_s14 }
  0x3f   : > { %p624_p13 = pneg %p623_p12  ;;  %p629_p10 = scmp.lt.s32.totalorder %s627_s29, %s621_s22 }
  0x41   : > { %p630_p2 = por %p629_p10, %p628_p7 }
  0x43   : > { %p631_p4 = pnand %p630_p2, %p624_p13 }
  0xc7   : > { %v245_v9 = vpop.xlane.xlu0 %244 }
  0xc8   : > { %v246_v10 = vmul.f32 0.00390625, %v245_v9 }
  0xca   : > { %v255_v11 = vrot.slane %v246_v10, %v254_v8 }
  0xcc   : > { %536 = vmatmul.mubr.msk.f32.vlgmr.msra.gmra.mrb[0].mxu0 %vm256_vm1, %v255_v11 }
 0x19f   : > { %v325_v14 = vpop.f32.mrb[0].mxu0 }
 0x1a0   : > { %v326_v15 = vadd.f32 %v325_v14, %v248_v13  ;;  %v537_v16 = vpop.f32.mrb[1].mxu0 }
 0x1a2   : > { %v329_v17 = vmax.f32 %v326_v15, 0.0 }
 0x1a4   : > { %541 = vmatmul.mubr.msk.f32.vlgmr.msra.gmra.mrb[0].mxu1 %vm332_vm3, %v329_v17 }
 0x277   : > { %v406_v19 = vpop.f32.mrb[0].mxu1 }
 0x278   : > { %v407_v20 = vadd.f32 %v406_v19, %v331_v18  ;;  %v542_v21 = vpop.f32.mrb[1].mxu1 }
 0x27a   : > { %v410_v22 = vmul.f32 0.16666667, %v407_v20 }
 0x27c   : > { %v411_v23 = vadd.f32 0.5, %v410_v22 }
 0x27e   : > { %v412_v24 = vmax.f32 %v411_v23, 0.0 }
 0x280   : > { %v413_v26 = vmin.f32 %v412_v24, 1.0 }
 0x282   : > { %v417_v27 = vrot.slane %v413_v26, %v416_v25 }
 0x284   : > { %419 = vbcast.lane.b32.xlu0 %v417_v27, 256 }
 0x2f6   : > { %v420_v28 = vpop.permute.xlu0 %419 }
 0x2f7   : > { %v421_v29 = vmul.f32 %v420_v28, %v241_v0  ;;  %v422_v30 = vmul.f32 %v420_v28, %v242_v1 }
 0x2f9   : > { %423 = vst [vmem:[%s240_s9] sm:$0xff] %v421_v29  ;;  %424 = vst [vmem:[%s240_s9 + $0x8] sm:$0xff] %v422_v30 }
 0x2fa   : > { %634 = shalt.err (!%p631_p4)
}
 0x2fb   : > { %s635_s13 = scalar_lea.hbm %s856_s15, 256  ;;  %s639_s26 = scalar_lea.hbm %s905_s5, 512 }
 0x2fc   : > { %p636_p5 = scmp.ne.s32.totalorder %s856_s15, %s635_s13  ;;  %p640_p0 = scmp.lt.u32.totalorder %s856_s15, %s905_s5 }
 0x2fd   : > { %p641_p1 = scmp.lt.u32.totalorder %s639_s26, %s635_s13  ;;  %p643_p6 = scmp.lt.u32.totalorder %s635_s13, %s856_s15 }
 0x2fe   : > { %p637_p8 = pnand %p636_p5, %p914_p11 }
 0x2ff   : > { %p642_p3 = por %p641_p1, %p640_p0 }
 0x300   : > { %p638_p9 = pneg %p637_p8 }
 0x301   : > { %p644_p12 = por %p643_p6, %p642_p3 }
 0x303   : > { %p645_p13 = pnand %p644_p12, %p638_p9 }
 0x305   : > { %648 = shalt.err (!%p645_p13)
}
 0x306   : > { %545 = dma.vmem_to_hbm [thread:$0]  (%p914_p11), %s858_s10, 256, %s856_s15, %s426_s12  }
 0x307 PF: > { %s452_s7 = sand.u32 1, %s675_s18   ;;  %p915_p7 = scmp.ne.s32.totalorder %s910_s6, 0 }
 0x308   : > { %p916_p10 = scmp.ge.s32.totalorder %s687_s21, 2  ;;  %s453_s9 = scalar_lea.sflag [#allocation4], %s452_s7 }
 0x30a   : > { %p552_p2 = pnand %p916_p10, %p915_p7 }
 0x30c   : > { %670 = dma.done.wait (!%p552_p2), %s453_s9, 256  }
 0x30d   : > { %672 = vsyncadd (!%p552_p2), %s453_s9, 4294967040  ;;  %p18_p4 = scmp.ge.s32.totalorder %s748_s24, 4   ;;  %s917_s18 = smov %s679_s19 }
 0x30e   : > { %s918_s19 = smov %s683_s20  ;;  %s919_s20 = smov %s760_s27 }
 0x30f   : > { %s920_s21 = smov %s748_s24  ;;  %20 = sbr.rel (!%p18_p4) target bundleno = 5 (0x5), region = 85 }
 0x316   :  { %458 = vsyncpa [#allocation3], 1 }
 0x317   :  { %460 = vsyncpa [#allocation3 + $0x1], 1 }
 0x318   :  { %461 = vsyncpa [#allocation4], 1 }
 0x319   :  { %463 = vsyncpa [#allocation4 + $0x1], 1 }

</bundles_post_ra>
